<compile_context>
chip_gen: v5e
topology: v5e:2x2
jax: 0.10.0
libtpu: 0.0.40
codegen_flags: <defaults>
</compile_context>

<pallas_src>
import math
import functools

import jax
import jax.numpy as jnp
from jax.experimental import pallas as pl
from jax.experimental.pallas import tpu as pltpu

LANE = 128          # TPU lane width; intermediate feature dims padded to this.
SUBLANE_BF16 = 16   # bf16 packs 16 rows per vreg sublane group.


def _round_up(n, m):
    return ((n + m - 1) // m) * m


def _pad2(a, rows, cols):
    return jnp.pad(a, ((0, rows - a.shape[0]), (0, cols - a.shape[1])))


# ---------------------------------------------------------------------------
# Pallas kernel: per (domain, batch-tile) step run the full fused MLP.
#   refs = (x_ref, w0, b0, w1, b1, ..., out_ref)
#   x:   (tile_b, K)        compute dtype (bf16)
#   w_l: (in_p, out_p)      compute dtype (bf16), zero-padded (last layer: true N)
#   b_l: (1, out_p)         f32, zero-padded
#   out: (tile_b, out_dim)  f32, true width (block last dim == full array dim)
# ---------------------------------------------------------------------------
def _fused_mlp_kernel(n_layers, *refs):
    x_ref = refs[0]
    out_ref = refs[-1]

    h = x_ref[...]
    for l in range(n_layers):
        w = refs[1 + 2 * l][...]
        b = refs[2 + 2 * l][...]                       # (1, out_p) f32, broadcasts
        z = jnp.dot(h, w, preferred_element_type=jnp.float32) + b
        z = jnp.maximum(z, 0.0)
        # Keep the final layer's activations in f32; re-quantize intermediates
        # to the matmul dtype for the next MXU pass.
        h = z if l == n_layers - 1 else z.astype(w.dtype)

    out_ref[...] = h.astype(out_ref.dtype)


def fused_mlp_forward(x2, Ws, Bs, *, tile_b):
    """x2: (2, Bp, K). Ws[l]: (2, in_p, out_p). Bs[l]: (2, 1, out_p)."""
    two, Bp, K = x2.shape
    assert two == 2
    assert Bp % tile_b == 0 and tile_b % SUBLANE_BF16 == 0
    out_dim = Ws[-1].shape[-1]          # final layer stored at TRUE width
    n_layers = len(Ws)

    args = [x2]
    in_specs = [pl.BlockSpec((None, tile_b, K), lambda d, i: (d, i, 0))]
    weight_bytes = 0
    flops = 0
    for W, B_ in zip(Ws, Bs):
        args.append(W)
        in_specs.append(pl.BlockSpec((None,) + W.shape[1:], lambda d, i: (d, 0, 0)))
        args.append(B_)
        in_specs.append(pl.BlockSpec((None,) + B_.shape[1:], lambda d, i: (d, 0, 0)))
        weight_bytes += W.size * W.dtype.itemsize + B_.size * B_.dtype.itemsize
        flops += 2 * 2 * Bp * W.shape[1] * W.shape[2]   # 2 domains

    bytes_accessed = (x2.size * x2.dtype.itemsize
                      + weight_bytes
                      + 2 * Bp * out_dim * 4)
    cost = pl.CostEstimate(flops=flops, transcendentals=0,
                           bytes_accessed=bytes_accessed)

    # VMEM guardrail (conservative): double-buffered x and out tiles, one
    # domain's weights (both buffers worst case), plus activation slack.
    per_step = (2 * tile_b * K * x2.dtype.itemsize
                + 2 * tile_b * out_dim * 4
                + 2 * weight_bytes
                + 4 * tile_b * LANE * 4)
    vmem_limit = int(min(48 << 20, max(2 * per_step + (4 << 20), 8 << 20)))

    kernel = functools.partial(_fused_mlp_kernel, n_layers)

    return pl.pallas_call(
        kernel,
        out_shape=jax.ShapeDtypeStruct((2, Bp, out_dim), jnp.float32),
        grid=(2, Bp // tile_b),
        in_specs=in_specs,
        out_specs=pl.BlockSpec((None, tile_b, out_dim), lambda d, i: (d, i, 0)),
        compiler_params=pltpu.CompilerParams(
            dimension_semantics=("parallel", "parallel"),
            vmem_limit_bytes=vmem_limit),
        cost_estimate=cost,
    )(*args)


# ---------------------------------------------------------------------------
# Parameter preparation (HOISTED: call once, cache result next to params).
# Fold W1 into layer 0, pad intermediate dims to lane-dense 128 (final layer
# keeps its true output width), stack user/item along a leading domain axis
# of size 2, cast matmul weights to the compute dtype.
# ---------------------------------------------------------------------------
def build_kernel_weights(params, compute_dtype=jnp.bfloat16):
    uW1, iW1 = params["user_W1"], params["item_W1"]
    uWs, uBs = params["user_Ws"], params["user_Bs"]
    iWs, iBs = params["item_Ws"], params["item_Bs"]
    assert len(uWs) == len(iWs) and len(uWs) >= 1, (
        "2-domain fusion requires user/item MLPs of equal depth")

    # Exact fold: x @ W1 @ W0 == x @ (W1 @ W0); bias/relu only after W0.
    u_layer_Ws = [uW1 @ uWs[0]] + list(uWs[1:])
    i_layer_Ws = [iW1 @ iWs[0]] + list(iWs[1:])
    n_layers = len(u_layer_Ws)

    Ws, Bs = [], []
    for l, (uw, iw, ub, ib) in enumerate(zip(u_layer_Ws, i_layer_Ws, uBs, iBs)):
        assert uw.shape == iw.shape, (
            "2-domain fusion requires matching user/item layer dims, got "
            f"{uw.shape} vs {iw.shape} at layer {l}")
        in_dim, out_dim = uw.shape
        in_p = in_dim if l == 0 else _round_up(in_dim, LANE)
        is_last = (l == n_layers - 1)
        out_p = out_dim if is_last else _round_up(out_dim, LANE)
        W = jnp.stack([_pad2(uw, in_p, out_p),
                       _pad2(iw, in_p, out_p)], axis=0).astype(compute_dtype)
        B_ = jnp.stack([_pad2(ub, 1, out_p),
                        _pad2(ib, 1, out_p)], axis=0).astype(jnp.float32)
        Ws.append(W)
        Bs.append(B_)
    return Ws, Bs


# ---------------------------------------------------------------------------
# Model wrapper (param init + gather glue + one fused kernel call)
# ---------------------------------------------------------------------------
def kaiming_uniform(key, shape, fan_in, a=math.sqrt(5)):
    gain = math.sqrt(2.0 / (1.0 + a * a))
    bound = gain * math.sqrt(3.0 / fan_in)
    return jax.random.uniform(key, shape, jnp.float32, -bound, bound)


def init_params(key, ksize, user_layer, item_layer):
    keys = jax.random.split(key, 2 + 4 * (len(user_layer) + len(item_layer)))
    ki = iter(keys)
    params = {}
    params["user_W1"] = kaiming_uniform(next(ki), (ksize, user_layer[0]), ksize)
    params["item_W1"] = kaiming_uniform(next(ki), (ksize, item_layer[0]), ksize)

    def make_stack(layer_dims):
        Ws, Bs = [], []
        for i in range(len(layer_dims) - 1):
            fan_in, fan_out = layer_dims[i], layer_dims[i + 1]
            # nn.Linear weight (out, in) kaiming-uniform; stored pre-transposed (in, out)
            Ws.append(kaiming_uniform(next(ki), (fan_in, fan_out), fan_in))
            bb = 1.0 / math.sqrt(fan_in)
            Bs.append(jax.random.uniform(next(ki), (1, fan_out), jnp.float32, -bb, bb))
        return Ws, Bs

    params["user_Ws"], params["user_Bs"] = make_stack(user_layer)
    params["item_Ws"], params["item_Bs"] = make_stack(item_layer)
    return params


def model_forward(kernel_Ws, kernel_Bs, node_features, shape, user_idx, item_idx,
                  *, tile_b=None, compute_dtype=jnp.bfloat16):
    """Equivalent of Model.forward(user, item). kernel_Ws/Bs from build_kernel_weights."""
    B = user_idx.shape[0]
    if tile_b is None:
        tile_b = min(512, _round_up(B, SUBLANE_BF16))
    tile_b = max(SUBLANE_BF16, _round_up(tile_b, SUBLANE_BF16))
    Bp = _round_up(B, tile_b)

    # One fused gather (user rows then item rows), cast to the compute dtype,
    # single reshape/pad. Embedding table may not fit VMEM in general, so the
    # gather stays in glue (see TODO at top for the in-kernel DMA version).
    idx = jnp.concatenate([user_idx, shape[0] + item_idx])
    x2 = jnp.take(node_features, idx, axis=0).astype(compute_dtype)
    x2 = x2.reshape(2, B, node_features.shape[1])
    if Bp != B:
        x2 = jnp.pad(x2, ((0, 0), (0, Bp - B), (0, 0)))

    out = fused_mlp_forward(x2, kernel_Ws, kernel_Bs, tile_b=tile_b)  # (2, Bp, out_dim) f32
    out = out[:, :B, :]
    return out[0], out[1]


def model_forward_ref(params, node_features, shape, user_idx, item_idx):
    """Pure-JAX f32 reference (mirrors the PyTorch forward exactly)."""
    def run(x, W1, Ws, Bs):
        h = x @ W1
        for w, b in zip(Ws, Bs):
            h = jnp.maximum(h @ w + b, 0.0)
        return h
    u_in = node_features[user_idx]
    i_in = node_features[shape[0] + item_idx]
    return (run(u_in, params["user_W1"], params["user_Ws"], params["user_Bs"]),
            run(i_in, params["item_W1"], params["item_Ws"], params["item_Bs"]))


# ---------------------------------------------------------------------------
if __name__ == "__main__":
    # Small synthetic configuration consistent with the module's shapes.
    KSIZE = 32
    USER_LAYER = [64, 48, 32]
    ITEM_LAYER = [64, 48, 32]
    NUM_USERS, NUM_ITEMS = 12, 20          # shape = (num_users, num_items)
    BATCH = 8

    key = jax.random.PRNGKey(0)
    k_feat, k_param, k_u, k_i = jax.random.split(key, 4)

    # Synthetic Node2Vec embeddings for all users+items (stand-in for Word2Vec load).
    node_features = jax.random.normal(
        k_feat, (NUM_USERS + NUM_ITEMS, KSIZE), jnp.float32)

    params = init_params(k_param, KSIZE, USER_LAYER, ITEM_LAYER)

    # Hoisted weight prep: fold/pad/stack/cast ONCE, reuse for every forward.
    kernel_Ws, kernel_Bs = build_kernel_weights(params, jnp.bfloat16)
    jax.block_until_ready((kernel_Ws, kernel_Bs))

    user_idx = jax.random.randint(k_u, (BATCH,), 0, NUM_USERS)
    item_idx = jax.random.randint(k_i, (BATCH,), 0, NUM_ITEMS)

    user_out, item_out = model_forward(
        kernel_Ws, kernel_Bs, node_features, (NUM_USERS, NUM_ITEMS),
        user_idx, item_idx)
    jax.block_until_ready((user_out, item_out))

    # Verify against the pure-JAX f32 reference (tolerance covers bf16 matmuls
    # and the exact-but-reordered W1 fold).
    u_ref, i_ref = model_forward_ref(
        params, node_features, (NUM_USERS, NUM_ITEMS), user_idx, item_idx)
    assert user_out.shape == (BATCH, USER_LAYER[-1])
    assert item_out.shape == (BATCH, ITEM_LAYER[-1])
    assert jnp.allclose(user_out, u_ref, atol=5e-2, rtol=5e-2), float(
        jnp.max(jnp.abs(user_out - u_ref)))
    assert jnp.allclose(item_out, i_ref, atol=5e-2, rtol=5e-2), float(
        jnp.max(jnp.abs(item_out - i_ref)))

    print("KERNEL_OK")
</pallas_src>

<mosaic_0001>
module attributes {stable_mosaic.version = 11 : i64} {
  func.func @_fused_mlp_kernel(%arg0: i32, %arg1: i32, %arg2: memref<1x16x32xbf16, #tpu.memory_space<vmem>>, %arg3: memref<1x32x128xbf16, #tpu.memory_space<vmem>>, %arg4: memref<1x1x128xf32, #tpu.memory_space<vmem>>, %arg5: memref<1x128x32xbf16, #tpu.memory_space<vmem>>, %arg6: memref<1x1x32xf32, #tpu.memory_space<vmem>>, %arg7: memref<1x16x32xf32, #tpu.memory_space<vmem>>) attributes {dimension_semantics = [#tpu.dimension_semantics<parallel>, #tpu.dimension_semantics<parallel>], iteration_bounds = array<i64: 2, 1>, scalar_prefetch = 0 : i64, scratch_operands = 0 : i64, tpu.core_type = #tpu.core_type<tc>, window_params = [{transform_indices = @transform_0, window_bounds = array<i64: 1, 16, 32>}, {transform_indices = @transform_1, window_bounds = array<i64: 1, 32, 128>}, {transform_indices = @transform_2, window_bounds = array<i64: 1, 1, 128>}, {transform_indices = @transform_3, window_bounds = array<i64: 1, 128, 32>}, {transform_indices = @transform_4, window_bounds = array<i64: 1, 1, 32>}, {transform_indices = @transform_5, window_bounds = array<i64: 1, 16, 32>}]} {
    %c0 = arith.constant 0 : index
    %c0_0 = arith.constant 0 : index
    %c0_1 = arith.constant 0 : index
    %0 = vector.load %arg2[%c0, %c0_0, %c0_1] : memref<1x16x32xbf16, #tpu.memory_space<vmem>>, vector<1x16x32xbf16>
    %1 = vector.shape_cast %0 : vector<1x16x32xbf16> to vector<16x32xbf16>
    %c0_2 = arith.constant 0 : index
    %c0_3 = arith.constant 0 : index
    %c0_4 = arith.constant 0 : index
    %2 = vector.load %arg3[%c0_2, %c0_3, %c0_4] : memref<1x32x128xbf16, #tpu.memory_space<vmem>>, vector<1x32x128xbf16>
    %3 = vector.shape_cast %2 : vector<1x32x128xbf16> to vector<32x128xbf16>
    %c0_5 = arith.constant 0 : index
    %c0_6 = arith.constant 0 : index
    %c0_7 = arith.constant 0 : index
    %4 = vector.load %arg4[%c0_5, %c0_6, %c0_7] : memref<1x1x128xf32, #tpu.memory_space<vmem>>, vector<1x1x128xf32>
    %5 = vector.shape_cast %4 : vector<1x1x128xf32> to vector<1x128xf32>
    %cst = arith.constant dense<0.000000e+00> : vector<16x128xf32>
    %6 = tpu.matmul %1, %3, %cst {dimension_numbers = #tpu.dot_dimension_numbers<[1], [0], [0], [1], [0, 0, 1, 1], [], []>} : vector<16x32xbf16>, vector<32x128xbf16>, vector<16x128xf32> -> vector<16x128xf32>
    %7 = vector.broadcast %5 : vector<1x128xf32> to vector<16x128xf32>
    %8 = arith.addf %6, %7 : vector<16x128xf32>
    %cst_8 = arith.constant 0.000000e+00 : f32
    %9 = vector.broadcast %cst_8 : f32 to vector<16x128xf32>
    %10 = arith.maximumf %8, %9 : vector<16x128xf32>
    %11 = arith.truncf %10 : vector<16x128xf32> to vector<16x128xbf16>
    %c0_9 = arith.constant 0 : index
    %c0_10 = arith.constant 0 : index
    %c0_11 = arith.constant 0 : index
    %12 = vector.load %arg5[%c0_9, %c0_10, %c0_11] : memref<1x128x32xbf16, #tpu.memory_space<vmem>>, vector<1x128x32xbf16>
    %13 = vector.shape_cast %12 : vector<1x128x32xbf16> to vector<128x32xbf16>
    %c0_12 = arith.constant 0 : index
    %c0_13 = arith.constant 0 : index
    %c0_14 = arith.constant 0 : index
    %14 = vector.load %arg6[%c0_12, %c0_13, %c0_14] : memref<1x1x32xf32, #tpu.memory_space<vmem>>, vector<1x1x32xf32>
    %15 = vector.shape_cast %14 : vector<1x1x32xf32> to vector<1x32xf32>
    %cst_15 = arith.constant dense<0.000000e+00> : vector<16x32xf32>
    %16 = tpu.matmul %11, %13, %cst_15 {dimension_numbers = #tpu.dot_dimension_numbers<[1], [0], [0], [1], [0, 0, 1, 1], [], []>} : vector<16x128xbf16>, vector<128x32xbf16>, vector<16x32xf32> -> vector<16x32xf32>
    %17 = vector.broadcast %15 : vector<1x32xf32> to vector<16x32xf32>
    %18 = arith.addf %16, %17 : vector<16x32xf32>
    %cst_16 = arith.constant 0.000000e+00 : f32
    %19 = vector.broadcast %cst_16 : f32 to vector<16x32xf32>
    %20 = arith.maximumf %18, %19 : vector<16x32xf32>
    %c0_17 = arith.constant 0 : index
    %c0_18 = arith.constant 0 : index
    %c0_19 = arith.constant 0 : index
    %21 = vector.load %arg7[%c0_17, %c0_18, %c0_19] : memref<1x16x32xf32, #tpu.memory_space<vmem>>, vector<1x16x32xf32>
    %22 = vector.shape_cast %21 : vector<1x16x32xf32> to vector<16x32xf32>
    %23 = vector.shape_cast %20 : vector<16x32xf32> to vector<1x16x32xf32>
    tpu.vector_store %arg7[%c0_17, %c0_18, %c0_19], %23 {strides = array<i32>} : memref<1x16x32xf32, #tpu.memory_space<vmem>>, vector<1x16x32xf32>,
    return
  }
  func.func @transform_0(%arg0: i32, %arg1: i32) -> (i32, i32, i32) {
    %c0_i32 = arith.constant 0 : i32
    %c0_i32_0 = arith.constant 0 : i32
    return %arg0, %arg1, %c0_i32 : i32, i32, i32
  }
  func.func @transform_1(%arg0: i32, %arg1: i32) -> (i32, i32, i32) {
    %c0_i32 = arith.constant 0 : i32
    %c0_i32_0 = arith.constant 0 : i32
    %c0_i32_1 = arith.constant 0 : i32
    return %arg0, %c0_i32, %c0_i32_0 : i32, i32, i32
  }
  func.func @transform_2(%arg0: i32, %arg1: i32) -> (i32, i32, i32) {
    %c0_i32 = arith.constant 0 : i32
    %c0_i32_0 = arith.constant 0 : i32
    %c0_i32_1 = arith.constant 0 : i32
    return %arg0, %c0_i32, %c0_i32_0 : i32, i32, i32
  }
  func.func @transform_3(%arg0: i32, %arg1: i32) -> (i32, i32, i32) {
    %c0_i32 = arith.constant 0 : i32
    %c0_i32_0 = arith.constant 0 : i32
    %c0_i32_1 = arith.constant 0 : i32
    return %arg0, %c0_i32, %c0_i32_0 : i32, i32, i32
  }
  func.func @transform_4(%arg0: i32, %arg1: i32) -> (i32, i32, i32) {
    %c0_i32 = arith.constant 0 : i32
    %c0_i32_0 = arith.constant 0 : i32
    %c0_i32_1 = arith.constant 0 : i32
    return %arg0, %c0_i32, %c0_i32_0 : i32, i32, i32
  }
  func.func @transform_5(%arg0: i32, %arg1: i32) -> (i32, i32, i32) {
    %c0_i32 = arith.constant 0 : i32
    %c0_i32_0 = arith.constant 0 : i32
    return %arg0, %arg1, %c0_i32 : i32, i32, i32
  }
}

</mosaic_0001>

<bundles_post_ra>
// kernel: tpu_custom_call.1
= control target key start
LH: loop header
LB: loop body
LE: loop exit
PB: predicated region body
PF: predicated region fallthrough
CT: control target
= control target key end

     0   :  { %10 = vsyncpa [#allocation3], 0  ;;  %s963_s0 = inlined_call_operand.vmem [shape: bf16[2,16,32], index: 0, kind: input, shape index: {}]   ;;  %s964_s1 = inlined_call_operand.vmem [shape: bf16[2,32,128], index: 1, kind: input, shape index: {}]   ;;  %s965_s2 = inlined_call_operand.vmem [shape: f32[2,1,128], index: 2, kind: input, shape index: {}]   ;;  %s966_s3 = inlined_call_operand.vmem [shape: bf16[2,128,32], index: 3, kind: input, shape index: {}]   ;;  %s967_s4 = inlined_call_operand.vmem [shape: f32[2,1,32], index: 4, kind: input, shape index: {}]   ;;  %s968_s5 = inlined_call_operand.hbm [shape: f32[2,16,32], index: 5, kind: output, shape index: {}]  }
   0x1   :  { %12 = vsyncpa [#allocation3 + $0x1], 0  ;;  %s844_s18 = smov 0   ;;  %s846_s19 = smov 0  }
   0x2   :  { %s848_s20 = smov 0   ;;  %s850_s21 = smov 0  }
   0x3   :  { %s852_s22 = smov 0   ;;  %s854_s23 = smov 0  }
   0x4 LB: > { %s596_s24 = sadd.s32 4294967295, %s810_s23   ;;  %s597_s25 = sadd.s32 4294967294, %s810_s23   ;;  %s810_s23 = sphi %s854_s23, %s18_s23   ;;  %s806_s22 = sphi %s852_s22, %s978_s22   ;;  %s802_s21 = sphi %s850_s21, %s977_s21   ;;  %s798_s20 = sphi %s848_s20, %s976_s20   ;;  %s794_s19 = sphi %s846_s19, %s975_s19   ;;  %s790_s18 = sphi %s844_s18, %s974_s18  }
   0x5   : > { %s30_s26 = sadd.s32 1, %s806_s22  ;;  %s171_s27 = sadd.s32 1, %s798_s20 }
   0x6   : > { %p32_p0 = scmp.ge.s32.totalorder %s30_s26, 2  ;;  %p181_p1 = scmp.ne.s32.totalorder %s798_s20, %s794_s19 }
   0x7   : > { %p182_p2 = scmp.eq.s32.totalorder %s596_s24, 1  ;;  %p187_p3 = scmp.ne.s32.totalorder %s794_s19, %s790_s18 }
   0x8   : > { %s980_s26 = smov (%p32_p0, %s30_s26), 0  ;;  %p188_p5 = scmp.eq.s32.totalorder %s597_s25, 1 }
   0x9   : > { %970 = sst [smem:[#allocation5_spill]] %s980_s26  ;;  %p884_p4 = por %p182_p2, %p181_p1 }
   0xa   : > { %s166_s29 = ssub.s32 %s806_s22, %s980_s26  ;;  %p600_p6 = scmp.ge.s32.totalorder %s810_s23, 1 }
   0xb   : > { %p169_p7 = scmp.eq.s32.totalorder %s166_s29, 0  ;;  %p891_p8 = por %p188_p5, %p187_p3 }
   0xc   : > { %p247_p9 = scmp.lt.s32.totalorder %s810_s23, 3 }
   0xd   : > { %s897_s6 = scalar_select %p169_p7, %s798_s20, %s171_s27  }
   0xe   : > { %p248_p10 = pnand %p600_p6, %p247_p9 }
   0xf   : > { %p296_p11 = scmp.lt.s32.totalorder (!%p248_p10), %s802_s21, 1  ;;  %s672_s11 = sshll.u32 (!%p248_p10), %s802_s21, 4 }
  0x10   : > { %251 = sbr.rel (%p248_p10) target bundleno = 315 (0x13b), region = 40  ;;  %s471_s14 = scalar_lea.hbm (!%p248_p10), %s968_s5, %s672_s11 }
  0x11   : > { %s474_s17 = sshll.u32 (!%p248_p10), %s471_s14, 4  ;;  %s475_s17 = int_to_ptr.hbm [resolvable:$true] %s474_s17 }
  0x15   : > { %s901_s7 = scalar_select %p296_p11, %s802_s21, 1  ;;  %vm350_vm0 = vcmask 261120  }
  0x16   : > { %s746_s21 = sshra.s32 %s475_s17, 4  ;;  %s747_s21 = int_to_ptr.hbm [resolvable:$true] %s746_s21 }
  0x17   : > { %s659_s8 = sshll.u32 %s901_s7, 4  ;;  %s660_s9 = sshll.u32 %s901_s7, 6 }
  0x18   : > { %s309_s12 = scalar_lea.vmem %s964_s1, %s659_s8  ;;  %s317_s15 = scalar_lea.vmem %s966_s3, %s660_s9 }
  0x19   : > { %v663_v0 = vld [vmem:[%s309_s12 + $0x8] sm:$0xff]  ;;  %s658_s16 = sshll.u32 %s901_s7, 3  ;;  %v671_v1 = vld [vmem:[%s317_s15 + $0x38] sm:$0xff]  ;;  %s312_s25 = scalar_lea.vmem %s965_s2, %s901_s7  ;;  %v662_v2 = vld [vmem:[%s309_s12] sm:$0xff] }
  0x1a   : > { %360 = vmatpush.bf16.msra.mxu0 %v663_v0  ;;  %s303_s26 = scalar_lea.vmem %s963_s0, %s658_s16  ;;  %439 = vmatpush.bf16.msra.mxu1 %v671_v1  ;;  %v670_v3 = vld [vmem:[%s317_s15 + $0x30] sm:$0xff]  ;;  %v669_v5 = vld [vmem:[%s317_s15 + $0x28] sm:$0xff]  ;;  %v668_v6 = vld [vmem:[%s317_s15 + $0x20] sm:$0xff]  ;;  %s320_s10 = scalar_lea.vmem %s967_s4, %s901_s7 }
  0x1b   : > { %v661_v4 = vld [vmem:[%s303_s26] sm:$0xff]  ;;  %v667_v7 = vld [vmem:[%s317_s15 + $0x18] sm:$0xff]  ;;  %v666_v8 = vld [vmem:[%s317_s15 + $0x10] sm:$0xff]  ;;  %s292_s26 = sand.u32 1, %s794_s19   ;;  %s752_s8 = scalar_lea.hbm %s968_s5, 32 }
  0x1c   : > { %v665_v9 = vld [vmem:[%s317_s15 + $0x8] sm:$0xff]  ;;  %v664_v10 = vld [vmem:[%s317_s15] sm:$0xff]  ;;  %s601_s7 = sshll.u32 %s292_s26, 4  ;;  %s458_s24 = scalar_lea.sflag [#allocation3], %s292_s26 }
  0x1d   : > { %v730_v12 = vld [vmem:[%s312_s25] ss:$0 sm:$0xff]  ;;  %s294_s15 = scalar_lea.vmem [#allocation2], %s601_s7  ;;  %s748_s25 = scalar_lea.hbm %s747_s21, 16 }
  0x1e   : > { %361 = vmatpush.bf16.msra.mxu0 %v662_v2  ;;  %440 = vmatpush.bf16.msra.mxu1 %v670_v3  ;;  %v731_v19 = vld [vmem:[%s320_s10] ss:$0 sm:$0xff]  ;;  %s472_s16 = sshll.u32 %s294_s15, 4  ;;  %p749_p12 = scmp.ne.s32.totalorder %s747_s21, %s748_s25  ;;  %s473_s16 = int_to_ptr.vmem [resolvable:$true] %s472_s16 }
  0x1f   : > { %p753_p1 = scmp.lt.s32.totalorder %s747_s21, %s968_s5  ;;  %p754_p2 = scmp.lt.s32.totalorder %s752_s8, %s748_s25 }
  0x20   : > { %p750_p13 = pnand %p749_p12, %p884_p4 }
  0x21   : > { %620 = vmatmul.msk.bf16.vlgmr.msra.gmra.mxu0 %vm350_vm0, %v661_v4  ;;  %p755_p3 = por %p754_p2, %p753_p1 }
  0x22   : > { %441 = vmatpush.bf16.msra.mxu1 %v669_v5  ;;  %p751_p0 = pneg %p750_p13 }
  0x24   : > { %p756_p5 = pnand %p755_p3, %p751_p0 }
  0x26   : > { %442 = vmatpush.bf16.msra.mxu1 %v668_v6 }
  0x2a   : > { %443 = vmatpush.bf16.msra.mxu1 %v667_v7 }
  0x2e   : > { %444 = vmatpush.bf16.msra.mxu1 %v666_v8 }
  0x32   : > { %445 = vmatpush.bf16.msra.mxu1 %v665_v9 }
  0x36   : > { %446 = vmatpush.bf16.msra.mxu1 %v664_v10 }
  0x9e   : > { %v363_v11 = vpop.f32.mrf.mxu0 }
  0x9f   : > { %v364_v13 = vadd.f32 %v730_v12, %v363_v11 }
  0xa1   : > { %v368_v16 = vmax.f32 %v364_v13, 0.0 }
  0xa6   : > { %v365_v14 = vpop.f32.mrf.mxu0 }
  0xa7   : > { %v366_v15 = vadd.f32 %v730_v12, %v365_v14 }
  0xa9   : > { %v369_v17 = vmax.f32 %v366_v15, 0.0 }
  0xab   : > { %v370_v18 = vpack.c.bf16 %v369_v17, %v368_v16 }
  0xad   : > { %447 = vmatmul.bf16.vlgmr.msra.gmra.mxu1 %v370_v18 }
 0x12a   : > { %v448_v20 = vpop.f32.mrf.mxu1 }
 0x12b   : > { %v449_v21 = vadd.f32 %v731_v19, %v448_v20 }
 0x12d   : > { %v453_v22 = vmax.f32 %v449_v21, 0.0 }
 0x12f   : > { %455 = vst.msk [vmem:[%s294_s15] sm:$0xff] %vm350_vm0, %v453_v22 }
 0x132   : > { %v450_v23 = vpop.f32.mrf.mxu1 }
 0x133   : > { %v451_v24 = vadd.f32 %v731_v19, %v450_v23 }
 0x135   : > { %v454_v25 = vmax.f32 %v451_v24, 0.0 }
 0x137   : > { %456 = vst.msk [vmem:[%s294_s15 + $0x8] sm:$0xff] %vm350_vm0, %v454_v25 }
 0x138   : > { %759 = shalt.err (!%p756_p5)
}
 0x139   : > { %s812_s26 = smov 128   ;;  %s813_s7 = smov 8  }
 0x13a   : > { %673 = dma.vmem_to_hbm [thread:$0]  (%p884_p4), %s473_s16, 256, %s475_s17, %s458_s24, %s812_s26, %s812_s26, %s813_s7  }
 0x13b PF: > { %p679_p6 = scmp.ge.s32.totalorder %s810_s23, 2  ;;  %s489_s11 = sand.u32 1, %s790_s18  }
 0x13c   : > { %s490_s12 = scalar_lea.sflag [#allocation3], %s489_s11 }
 0x13d   : > { %p676_p7 = pnand %p679_p6, %p891_p8 }
 0x13f   : > { %p677_p9 = pneg %p676_p7 }
 0x141   : > { %785 = dma.done.wait (%p677_p9), %s490_s12, 256  }
 0x142   : > { %787 = vsyncadd (%p677_p9), %s490_s12, 4294967040  ;;  %s18_s23 = sadd.s32 1, %s810_s23   ;;  %s973_s28 = sld [smem:[#allocation5_spill]] }
 0x143   : > { %p15_p10 = scmp.ge.s32.totalorder %s18_s23, 4   ;;  %s974_s18 = smov %s794_s19 }
 0x144   : > { %s975_s19 = smov %s798_s20  ;;  %s976_s20 = smov %s897_s6 }
 0x145   : > { %s977_s21 = smov %s806_s22  ;;  %17 = sbr.rel (!%p15_p10) target bundleno = 4 (0x4), region = 87 }
 0x148   : > { %s978_s22 = smov %s973_s28 }
 0x14a   :  { %496 = vsyncpa [#allocation3], 1 }
 0x14b   :  { %498 = vsyncpa [#allocation3 + $0x1], 1 }

</bundles_post_ra>
